<compile_context>
chip_gen: v6e
topology: v6e:2x2x1
jax: 0.10.0
libtpu: 0.0.40
codegen_flags: <defaults>
</compile_context>

<pallas_src>
import jax
import jax.numpy as jnp
from jax.experimental import pallas as pl
from jax.experimental.pallas import tpu as pltpu

# --- problem sizes (synthetic, consistent with a small Gomoku board) --------
SIZE_X, SIZE_Y = 8, 8                  # board.size_x, board.size_y
D_IN = SIZE_X * SIZE_Y                 # 64
H1, H2 = 128, 128                      # algorithm.linear = [128, 128]
D_OUT = D_IN                           # 64

# (block_b, 128) f32 activations: keep x + hidden comfortably in the 64-vreg
# file; beyond 256 rows the single-step win turns into spill traffic.
_MAX_F32_BLOCK = 256


def dqn_kernel(x_ref, w1_ref, b1_ref, w2_ref, b2_ref, w3_ref, b3_ref, o_ref):
    x = x_ref[...]                                              # (TB, D_IN)
    # fc1 + relu  (f32 accumulation; bias/ReLU kept in f32 — safe on v5e VPU)
    h = jnp.dot(x, w1_ref[...], preferred_element_type=jnp.float32) + b1_ref[...]
    h = jnp.maximum(h, 0.0).astype(w2_ref.dtype)
    # fc2 + relu
    h = jnp.dot(h, w2_ref[...], preferred_element_type=jnp.float32) + b2_ref[...]
    h = jnp.maximum(h, 0.0).astype(w3_ref.dtype)
    # fc3 (no activation)
    o_ref[...] = (jnp.dot(h, w3_ref[...], preferred_element_type=jnp.float32)
                  + b3_ref[...]).astype(o_ref.dtype)


def prepare_params(params, compute_dtype=jnp.float32):
    """One-time prep: transpose torch-layout (out,in)->(in,out) and cast weights
    to the compute dtype (bf16 halves activation/weight DMA bytes at large
    batch).  Biases stay f32.  Call once at init, not per forward."""
    return {
        "w1": params["w1"].T.astype(compute_dtype),            # (D_IN, H1)
        "b1": params["b1"].reshape(1, H1).astype(jnp.float32),
        "w2": params["w2"].T.astype(compute_dtype),            # (H1, H2)
        "b2": params["b2"].reshape(1, H2).astype(jnp.float32),
        "w3": params["w3"].T.astype(compute_dtype),            # (H2, D_OUT)
        "b3": params["b3"].reshape(1, D_OUT).astype(jnp.float32),
    }


def _choose_block_b(b):
    """Generation-aware batch tile (pure-Python, trace-time decision):
    one big step on single-TC v5e/v6e, an even >=2-step grid on dual-TC v7x."""
    kind = ""
    try:
        kind = jax.devices()[0].device_kind.lower()
    except Exception:
        pass
    if "v7" in kind and b >= 16:
        steps = max(2, -(-b // _MAX_F32_BLOCK))
        steps += steps % 2                          # even step count -> both TCs busy
        per = -(-b // steps)
        blk = -(-per // 8) * 8                      # round up to sublane multiple
        return max(8, min(blk, _MAX_F32_BLOCK))
    if b <= _MAX_F32_BLOCK:
        return b                                    # single step, full-dim block, no pad
    return _MAX_F32_BLOCK


def dqn_forward(x, prepared, *, block_b=None):
    """x: (B, D_IN) float32. prepared: output of prepare_params()."""
    b = x.shape[0]
    compute_dtype = prepared["w1"].dtype
    if block_b is None:
        block_b = _choose_block_b(b)
    b_pad = -(-b // block_b) * block_b

    x_c = x.astype(compute_dtype)          # bf16 path halves input DMA bytes
    if b_pad != b:                         # static check: no copy when batch divides
        x_c = jnp.pad(x_c, ((0, b_pad - b), (0, 0)))

    act_in = pl.BlockSpec((block_b, D_IN), lambda i: (i, 0))    # batch-tiled
    act_out = pl.BlockSpec((block_b, D_OUT), lambda i: (i, 0))
    res = lambda shape: pl.BlockSpec(shape, lambda i: (0, 0))   # weight-resident

    out = pl.pallas_call(
        dqn_kernel,
        out_shape=jax.ShapeDtypeStruct((b_pad, D_OUT), jnp.float32),
        grid=(b_pad // block_b,),
        in_specs=[
            act_in,
            res((D_IN, H1)), res((1, H1)),
            res((H1, H2)), res((1, H2)),
            res((H2, D_OUT)), res((1, D_OUT)),
        ],
        out_specs=act_out,
        compiler_params=pltpu.CompilerParams(
            dimension_semantics=("parallel",)),   # shards batch across v7x's 2 TCs
    )(x_c, prepared["w1"], prepared["b1"], prepared["w2"], prepared["b2"],
      prepared["w3"], prepared["b3"])
    return out if b_pad == b else out[:b]


def init_params(key):
    """Deterministic init mimicking nn.Linear's U(-1/sqrt(fan_in), +...)."""
    ks = jax.random.split(key, 6)

    def lin(kw, kb, fan_in, fan_out):
        bound = 1.0 / jnp.sqrt(fan_in)
        w = jax.random.uniform(kw, (fan_out, fan_in), jnp.float32, -bound, bound)
        b = jax.random.uniform(kb, (fan_out,), jnp.float32, -bound, bound)
        return w, b

    w1, b1 = lin(ks[0], ks[1], D_IN, H1)
    w2, b2 = lin(ks[2], ks[3], H1, H2)
    w3, b3 = lin(ks[4], ks[5], H2, D_OUT)
    return {"w1": w1, "b1": b1, "w2": w2, "b2": b2, "w3": w3, "b3": b3}


def dqn_reference(x, p):
    h = jnp.maximum(x @ p["w1"].T + p["b1"], 0.0)
    h = jnp.maximum(h @ p["w2"].T + p["b2"], 0.0)
    return h @ p["w3"].T + p["b3"]


if __name__ == "__main__":
    key = jax.random.PRNGKey(0)
    k_small, k_big, k_p = jax.random.split(key, 3)
    params = init_params(k_p)

    fwd = jax.jit(dqn_forward, static_argnames=("block_b",))

    # small batch, f32 compute — tight check against the reference
    x_small = jax.random.normal(k_small, (8, D_IN), jnp.float32)
    ref_small = dqn_reference(x_small, params)
    out_small = jax.block_until_ready(fwd(x_small, prepare_params(params, jnp.float32)))
    assert out_small.shape == (8, D_OUT)
    assert jnp.allclose(out_small, ref_small, atol=1e-4, rtol=1e-4)

    # larger, non-multiple batch (exercises tiling / optional pad path), f32
    x_big = jax.random.normal(k_big, (200, D_IN), jnp.float32)
    ref_big = dqn_reference(x_big, params)
    out_f32 = jax.block_until_ready(fwd(x_big, prepare_params(params, jnp.float32)))
    assert out_f32.shape == (200, D_OUT)
    assert jnp.allclose(out_f32, ref_big, atol=1e-4, rtol=1e-4)

    # bf16 activation/weight path (f32 accumulation) — for DMA-bound large batch
    out_bf16 = jax.block_until_ready(fwd(x_big, prepare_params(params, jnp.bfloat16)))
    assert out_bf16.shape == (200, D_OUT)
    assert float(jnp.max(jnp.abs(out_bf16 - ref_big))) < 5e-2

    print("KERNEL_OK")
</pallas_src>

<mosaic_0001>
module attributes {stable_mosaic.version = 11 : i64} {
  func.func @dqn_kernel(%arg0: i32, %arg1: memref<8x64xf32, #tpu.memory_space<vmem>>, %arg2: memref<64x128xf32, #tpu.memory_space<vmem>>, %arg3: memref<1x128xf32, #tpu.memory_space<vmem>>, %arg4: memref<128x128xf32, #tpu.memory_space<vmem>>, %arg5: memref<1x128xf32, #tpu.memory_space<vmem>>, %arg6: memref<128x64xf32, #tpu.memory_space<vmem>>, %arg7: memref<1x64xf32, #tpu.memory_space<vmem>>, %arg8: memref<8x64xf32, #tpu.memory_space<vmem>>) attributes {dimension_semantics = [#tpu.dimension_semantics<parallel>], iteration_bounds = array<i64: 1>, scalar_prefetch = 0 : i64, scratch_operands = 0 : i64, tpu.core_type = #tpu.core_type<tc>, window_params = [{transform_indices = @transform_0, window_bounds = array<i64: 8, 64>}, {pipeline_mode = #tpu.pipeline_mode<synchronous>, transform_indices = @transform_1, window_bounds = array<i64: 64, 128>}, {pipeline_mode = #tpu.pipeline_mode<synchronous>, transform_indices = @transform_2, window_bounds = array<i64: 1, 128>}, {pipeline_mode = #tpu.pipeline_mode<synchronous>, transform_indices = @transform_3, window_bounds = array<i64: 128, 128>}, {pipeline_mode = #tpu.pipeline_mode<synchronous>, transform_indices = @transform_4, window_bounds = array<i64: 1, 128>}, {pipeline_mode = #tpu.pipeline_mode<synchronous>, transform_indices = @transform_5, window_bounds = array<i64: 128, 64>}, {pipeline_mode = #tpu.pipeline_mode<synchronous>, transform_indices = @transform_6, window_bounds = array<i64: 1, 64>}, {transform_indices = @transform_7, window_bounds = array<i64: 8, 64>}]} {
    %c0 = arith.constant 0 : index
    %c0_0 = arith.constant 0 : index
    %0 = vector.load %arg1[%c0, %c0_0] : memref<8x64xf32, #tpu.memory_space<vmem>>, vector<8x64xf32>
    %c0_1 = arith.constant 0 : index
    %c0_2 = arith.constant 0 : index
    %1 = vector.load %arg2[%c0_1, %c0_2] : memref<64x128xf32, #tpu.memory_space<vmem>>, vector<64x128xf32>
    %cst = arith.constant dense<0.000000e+00> : vector<8x128xf32>
    %2 = tpu.matmul %0, %1, %cst {dimension_numbers = #tpu.dot_dimension_numbers<[1], [0], [0], [1], [0, 0, 1, 1], [], []>} : vector<8x64xf32>, vector<64x128xf32>, vector<8x128xf32> -> vector<8x128xf32>
    %c0_3 = arith.constant 0 : index
    %c0_4 = arith.constant 0 : index
    %3 = vector.load %arg3[%c0_3, %c0_4] : memref<1x128xf32, #tpu.memory_space<vmem>>, vector<1x128xf32>
    %4 = vector.broadcast %3 : vector<1x128xf32> to vector<8x128xf32>
    %5 = arith.addf %2, %4 : vector<8x128xf32>
    %cst_5 = arith.constant 0.000000e+00 : f32
    %6 = vector.broadcast %cst_5 : f32 to vector<8x128xf32>
    %7 = arith.maximumf %5, %6 : vector<8x128xf32>
    %c0_6 = arith.constant 0 : index
    %c0_7 = arith.constant 0 : index
    %8 = vector.load %arg4[%c0_6, %c0_7] : memref<128x128xf32, #tpu.memory_space<vmem>>, vector<128x128xf32>
    %cst_8 = arith.constant dense<0.000000e+00> : vector<8x128xf32>
    %9 = tpu.matmul %7, %8, %cst_8 {dimension_numbers = #tpu.dot_dimension_numbers<[1], [0], [0], [1], [0, 0, 1, 1], [], []>} : vector<8x128xf32>, vector<128x128xf32>, vector<8x128xf32> -> vector<8x128xf32>
    %c0_9 = arith.constant 0 : index
    %c0_10 = arith.constant 0 : index
    %10 = vector.load %arg5[%c0_9, %c0_10] : memref<1x128xf32, #tpu.memory_space<vmem>>, vector<1x128xf32>
    %11 = vector.broadcast %10 : vector<1x128xf32> to vector<8x128xf32>
    %12 = arith.addf %9, %11 : vector<8x128xf32>
    %cst_11 = arith.constant 0.000000e+00 : f32
    %13 = vector.broadcast %cst_11 : f32 to vector<8x128xf32>
    %14 = arith.maximumf %12, %13 : vector<8x128xf32>
    %c0_12 = arith.constant 0 : index
    %c0_13 = arith.constant 0 : index
    %15 = vector.load %arg6[%c0_12, %c0_13] : memref<128x64xf32, #tpu.memory_space<vmem>>, vector<128x64xf32>
    %cst_14 = arith.constant dense<0.000000e+00> : vector<8x64xf32>
    %16 = tpu.matmul %14, %15, %cst_14 {dimension_numbers = #tpu.dot_dimension_numbers<[1], [0], [0], [1], [0, 0, 1, 1], [], []>} : vector<8x128xf32>, vector<128x64xf32>, vector<8x64xf32> -> vector<8x64xf32>
    %c0_15 = arith.constant 0 : index
    %c0_16 = arith.constant 0 : index
    %17 = vector.load %arg7[%c0_15, %c0_16] : memref<1x64xf32, #tpu.memory_space<vmem>>, vector<1x64xf32>
    %18 = vector.broadcast %17 : vector<1x64xf32> to vector<8x64xf32>
    %19 = arith.addf %16, %18 : vector<8x64xf32>
    %c0_17 = arith.constant 0 : index
    %c0_18 = arith.constant 0 : index
    %20 = vector.load %arg8[%c0_17, %c0_18] : memref<8x64xf32, #tpu.memory_space<vmem>>, vector<8x64xf32>
    tpu.vector_store %arg8[%c0_17, %c0_18], %19 {strides = array<i32>} : memref<8x64xf32, #tpu.memory_space<vmem>>, vector<8x64xf32>,
    return
  }
  func.func @transform_0(%arg0: i32) -> (i32, i32) {
    %c0_i32 = arith.constant 0 : i32
    %c0_i32_0 = arith.constant 0 : i32
    return %arg0, %c0_i32 : i32, i32
  }
  func.func @transform_1(%arg0: i32) -> (i32, i32) {
    %c0_i32 = arith.constant 0 : i32
    %c0_i32_0 = arith.constant 0 : i32
    %c0_i32_1 = arith.constant 0 : i32
    return %c0_i32, %c0_i32_0 : i32, i32
  }
  func.func @transform_2(%arg0: i32) -> (i32, i32) {
    %c0_i32 = arith.constant 0 : i32
    %c0_i32_0 = arith.constant 0 : i32
    %c0_i32_1 = arith.constant 0 : i32
    return %c0_i32, %c0_i32_0 : i32, i32
  }
  func.func @transform_3(%arg0: i32) -> (i32, i32) {
    %c0_i32 = arith.constant 0 : i32
    %c0_i32_0 = arith.constant 0 : i32
    %c0_i32_1 = arith.constant 0 : i32
    return %c0_i32, %c0_i32_0 : i32, i32
  }
  func.func @transform_4(%arg0: i32) -> (i32, i32) {
    %c0_i32 = arith.constant 0 : i32
    %c0_i32_0 = arith.constant 0 : i32
    %c0_i32_1 = arith.constant 0 : i32
    return %c0_i32, %c0_i32_0 : i32, i32
  }
  func.func @transform_5(%arg0: i32) -> (i32, i32) {
    %c0_i32 = arith.constant 0 : i32
    %c0_i32_0 = arith.constant 0 : i32
    %c0_i32_1 = arith.constant 0 : i32
    return %c0_i32, %c0_i32_0 : i32, i32
  }
  func.func @transform_6(%arg0: i32) -> (i32, i32) {
    %c0_i32 = arith.constant 0 : i32
    %c0_i32_0 = arith.constant 0 : i32
    %c0_i32_1 = arith.constant 0 : i32
    return %c0_i32, %c0_i32_0 : i32, i32
  }
  func.func @transform_7(%arg0: i32) -> (i32, i32) {
    %c0_i32 = arith.constant 0 : i32
    %c0_i32_0 = arith.constant 0 : i32
    return %arg0, %c0_i32 : i32, i32
  }
}

</mosaic_0001>

<bundles_post_ra>
// kernel: dqn_forward.1
= control target key start
LH: loop header
LB: loop body
LE: loop exit
PB: predicated region body
PF: predicated region fallthrough
CT: control target
= control target key end

     0   :  { %12 = vsyncpa [#allocation3], 0  ;;  %s781_s0 = inlined_call_operand.vmem [shape: f32[8,64], index: 0, kind: input, shape index: {}]   ;;  %s782_s1 = inlined_call_operand.vmem [shape: f32[64,128], index: 1, kind: input, shape index: {}]   ;;  %s783_s2 = inlined_call_operand.vmem [shape: f32[1,128], index: 2, kind: input, shape index: {}]   ;;  %s784_s3 = inlined_call_operand.vmem [shape: f32[128,128], index: 3, kind: input, shape index: {}]   ;;  %s785_s4 = inlined_call_operand.hbm [shape: f32[1,128], index: 4, kind: input, shape index: {}]   ;;  %s786_s5 = inlined_call_operand.vmem [shape: f32[128,64], index: 5, kind: input, shape index: {}]   ;;  %s787_s6 = inlined_call_operand.hbm [shape: f32[1,64], index: 6, kind: input, shape index: {}]   ;;  %s788_s7 = inlined_call_operand.hbm [shape: f32[8,64], index: 7, kind: output, shape index: {}]  }
   0x1   :  { %13 = vsyncpa [#allocation6], 0 }
   0x2   :  { %14 = vsyncpa [#allocation4], 0  ;;  %s553_s24 = smov [#allocation2]   ;;  %s554_s26 = smov [#allocation5]  }
   0x3   :  { %s29_s25 = sshll.u32 %s553_s24, 4  ;;  %s41_s27 = sshll.u32 %s554_s26, 4  ;;  %s30_s25 = int_to_ptr.vmem [resolvable:$true] %s29_s25  ;;  %s42_s27 = int_to_ptr.vmem [resolvable:$true] %s41_s27 }
   0x4   :  { %s495_s28 = scalar_lea.vmem %s30_s25, 16  ;;  %s499_s29 = scalar_lea.vmem %s30_s25, 32 }
   0x5   :  { %p496_p0 = scmp.ne.s32.totalorder %s30_s25, %s495_s28  ;;  %p500_p1 = scmp.lt.s32.totalorder %s30_s25, %s30_s25 }
   0x6   :  { %p501_p2 = scmp.lt.s32.totalorder %s499_s29, %s495_s28 }
   0x8   :  { %p502_p3 = por %p501_p2, %p500_p1 }
   0xa   :  { %p503_p4 = pnand %p502_p3, %p496_p0 }
   0xc   :  { %506 = shalt.err (!%p503_p4)
}
   0xd   :  { %32 = dma.hbm_to_vmem [thread:$0]  %s785_s4, 16, %s30_s25, [#allocation3]  }
   0xe   :  { %s515_s9 = scalar_lea.vmem %s42_s27, 16  ;;  %s519_s10 = scalar_lea.vmem %s42_s27, 32 }
   0xf   :  { %p516_p5 = scmp.ne.s32.totalorder %s42_s27, %s515_s9  ;;  %p520_p6 = scmp.lt.s32.totalorder %s42_s27, %s42_s27 }
  0x10   :  { %p521_p7 = scmp.lt.s32.totalorder %s519_s10, %s515_s9 }
  0x12   :  { %p522_p8 = por %p521_p7, %p520_p6 }
  0x14   :  { %p523_p9 = pnand %p522_p8, %p516_p5 }
  0x16   :  { %526 = shalt.err (!%p523_p9)
}
  0x17   :  { %44 = dma.hbm_to_vmem [thread:$0]  %s787_s6, 16, %s42_s27, [#allocation6]  }
  0x18   :  { %547 = dma.done.wait [#allocation3], 16  }
  0x19   :  { %548 = vsyncadd [#allocation3], 4294967280 }
  0x1a   :  { %549 = dma.done.wait [#allocation6], 16  }
  0x1b   :  { %550 = vsyncadd [#allocation6], 4294967280  ;;  %v555_v0 = vmov 0.0   ;;  %vm556_vm0 = vmmov 0   ;;  %v59_v1 = vld [vmem:[%s782_s1 + $0x38] sm:$0xff]  ;;  %v58_v2 = vld [vmem:[%s782_s1 + $0x30] sm:$0xff] }
  0x1c   :  { %393 = vmatprep.subr.mxu0 %v555_v0  ;;  %409 = vmatprep.mubr.msk.f32.mxu0 %vm556_vm0, %v555_v0  ;;  %v57_v3 = vld [vmem:[%s782_s1 + $0x28] sm:$0xff]  ;;  %v157_v4 = vld [vmem:[%s784_s3 + $0x78] sm:$0xff]  ;;  %v156_v5 = vld [vmem:[%s784_s3 + $0x70] sm:$0xff]  ;;  %vm67_vm1 = vcmask 523264   ;;  %s557_s14 = smov [#allocation7]  }
  0x1d   :  { %412 = vmatprep.subr.mxu1 %v555_v0  ;;  %444 = vmatprep.mubr.msk.f32.mxu1 %vm556_vm0, %v555_v0  ;;  %v56_v6 = vld [vmem:[%s782_s1 + $0x20] sm:$0xff]  ;;  %v155_v7 = vld [vmem:[%s784_s3 + $0x68] sm:$0xff]  ;;  %v55_v8 = vld [vmem:[%s782_s1 + $0x18] sm:$0xff] }
  0x1e   :  { %394 = vmatpush3.msra.mxu0 %v59_v1  ;;  %413 = vmatpush3.msra.mxu1 %v157_v4  ;;  %v154_v9 = vld [vmem:[%s784_s3 + $0x60] sm:$0xff]  ;;  %v54_v10 = vld [vmem:[%s782_s1 + $0x10] sm:$0xff]  ;;  %v153_v11 = vld [vmem:[%s784_s3 + $0x58] sm:$0xff] }
  0x1f   :  { %395 = vmatprep.subr.mxu0 %v555_v0  ;;  %414 = vmatprep.subr.mxu1 %v555_v0  ;;  %v53_v12 = vld [vmem:[%s782_s1 + $0x8] sm:$0xff]  ;;  %v152_v13 = vld [vmem:[%s784_s3 + $0x50] sm:$0xff]  ;;  %v52_v14 = vld [vmem:[%s782_s1] sm:$0xff] }
  0x20   :  { %396 = vmatpush3.msra.mxu0 %v58_v2  ;;  %415 = vmatpush3.msra.mxu1 %v156_v5  ;;  %v51_v15 = vld [vmem:[%s781_s0] sm:$0xff]  ;;  %v151_v16 = vld [vmem:[%s784_s3 + $0x48] sm:$0xff]  ;;  %v149_v18 = vld [vmem:[%s784_s3 + $0x38] sm:$0xff] }
  0x21   :  { %397 = vmatprep.subr.mxu0 %v555_v0  ;;  %416 = vmatprep.subr.mxu1 %v555_v0  ;;  %v150_v17 = vld [vmem:[%s784_s3 + $0x40] sm:$0xff]  ;;  %v148_v19 = vld [vmem:[%s784_s3 + $0x30] sm:$0xff]  ;;  %v147_v20 = vld [vmem:[%s784_s3 + $0x28] sm:$0xff] }
  0x22   :  { %398 = vmatpush3.msra.mxu0 %v57_v3  ;;  %417 = vmatpush3.msra.mxu1 %v155_v7  ;;  %v146_v21 = vld [vmem:[%s784_s3 + $0x20] sm:$0xff]  ;;  %v145_v22 = vld [vmem:[%s784_s3 + $0x18] sm:$0xff]  ;;  %v144_v23 = vld [vmem:[%s784_s3 + $0x10] sm:$0xff] }
  0x23   :  { %399 = vmatprep.subr.mxu0 %v555_v0  ;;  %418 = vmatprep.subr.mxu1 %v555_v0  ;;  %v143_v24 = vld [vmem:[%s784_s3 + $0x8] sm:$0xff]  ;;  %v142_v25 = vld [vmem:[%s784_s3] sm:$0xff]  ;;  %v251_v26 = vld [vmem:[%s786_s5 + $0x78] sm:$0xff]  ;;  %s336_s3 = sshll.u32 %s557_s14, 4  ;;  %s337_s3 = int_to_ptr.vmem [resolvable:$true] %s336_s3 }
  0x24   :  { %400 = vmatpush3.msra.mxu0 %v56_v6  ;;  %419 = vmatpush3.msra.mxu1 %v154_v9  ;;  %v250_v27 = vld [vmem:[%s786_s5 + $0x70] sm:$0xff]  ;;  %v249_v28 = vld [vmem:[%s786_s5 + $0x68] sm:$0xff]  ;;  %v248_v29 = vld [vmem:[%s786_s5 + $0x60] sm:$0xff]  ;;  %s527_s15 = scalar_lea.vmem %s337_s3, 128  ;;  %p532_p11 = scmp.lt.s32.totalorder %s337_s3, %s337_s3 }
  0x25   :  { %401 = vmatprep.subr.mxu0 %v555_v0  ;;  %420 = vmatprep.subr.mxu1 %v555_v0  ;;  %v247_v30 = vld [vmem:[%s786_s5 + $0x58] sm:$0xff]  ;;  %v246_v31 = vld [vmem:[%s786_s5 + $0x50] sm:$0xff]  ;;  %v245_v32 = vld [vmem:[%s786_s5 + $0x48] sm:$0xff]  ;;  %p528_p10 = scmp.ne.s32.totalorder %s337_s3, %s527_s15  ;;  %p533_p12 = scmp.lt.s32.totalorder %s527_s15, %s527_s15 }
  0x26   :  { %402 = vmatpush3.msra.mxu0 %v55_v8  ;;  %421 = vmatpush3.msra.mxu1 %v153_v11  ;;  %v244_v33 = vld [vmem:[%s786_s5 + $0x40] sm:$0xff]  ;;  %v243_v34 = vld [vmem:[%s786_s5 + $0x38] sm:$0xff]  ;;  %v242_v35 = vld [vmem:[%s786_s5 + $0x30] sm:$0xff] }
  0x27   :  { %403 = vmatprep.subr.mxu0 %v555_v0  ;;  %422 = vmatprep.subr.mxu1 %v555_v0  ;;  %v241_v36 = vld [vmem:[%s786_s5 + $0x28] sm:$0xff]  ;;  %v240_v37 = vld [vmem:[%s786_s5 + $0x20] sm:$0xff]  ;;  %v239_v38 = vld [vmem:[%s786_s5 + $0x18] sm:$0xff]  ;;  %p534_p13 = por %p533_p12, %p532_p11 }
  0x28   :  { %404 = vmatpush3.msra.mxu0 %v54_v10  ;;  %423 = vmatpush3.msra.mxu1 %v152_v13  ;;  %v346_v39 = vld [vmem:[%s783_s2] ss:$0 sm:$0xff]  ;;  %v238_v44 = vld [vmem:[%s786_s5 + $0x10] sm:$0xff]  ;;  %v237_v45 = vld [vmem:[%s786_s5 + $0x8] sm:$0xff] }
  0x29   :  { %405 = vmatprep.subr.mxu0 %v555_v0  ;;  %424 = vmatprep.subr.mxu1 %v555_v0  ;;  %v236_v46 = vld [vmem:[%s786_s5] sm:$0xff]  ;;  %p535_p0 = pnand %p534_p13, %p528_p10 }
  0x2a   :  { %406 = vmatpush3.msra.mxu0 %v53_v12  ;;  %425 = vmatpush3.msra.mxu1 %v151_v16  ;;  %v348_v47 = vld [vmem:[#allocation2] ss:$0 sm:$0xff]  ;;  %v349_v52 = vld [vmem:[#allocation5] ss:$0 sm:$0xff] }
  0x2b   :  { %407 = vmatprep.subr.mxu0 %v555_v0  ;;  %426 = vmatprep.subr.mxu1 %v555_v0 }
  0x2c   :  { %408 = vmatpush3.msra.mxu0 %v52_v14  ;;  %427 = vmatpush3.msra.mxu1 %v150_v17 }
  0x2d   :  { %410 = vmatmul.mubr.msk.f32.vlgmr.msra.gmra.mxu0 %vm67_vm1, %v51_v15  ;;  %447 = vmatprep.subr.mxu0 %v555_v0 }
  0x2e   :  { %479 = vmatprep.mubr.msk.f32.mxu0 %vm556_vm0, %v555_v0  ;;  %428 = vmatprep.subr.mxu1 %v555_v0 }
  0x2f   :  { %429 = vmatpush3.msra.mxu1 %v149_v18  ;;  %448 = vmatpush3.msra.mxu0 %v251_v26 }
  0x30   :  { %430 = vmatprep.subr.mxu1 %v555_v0  ;;  %449 = vmatprep.subr.mxu0 %v555_v0 }
  0x31   :  { %431 = vmatpush3.msra.mxu1 %v148_v19  ;;  %450 = vmatpush3.msra.mxu0 %v250_v27 }
  0x32   :  { %432 = vmatprep.subr.mxu1 %v555_v0  ;;  %451 = vmatprep.subr.mxu0 %v555_v0 }
  0x33   :  { %433 = vmatpush3.msra.mxu1 %v147_v20  ;;  %452 = vmatpush3.msra.mxu0 %v249_v28 }
  0x34   :  { %434 = vmatprep.subr.mxu1 %v555_v0  ;;  %453 = vmatprep.subr.mxu0 %v555_v0 }
  0x35   :  { %435 = vmatpush3.msra.mxu1 %v146_v21  ;;  %454 = vmatpush3.msra.mxu0 %v248_v29 }
  0x36   :  { %436 = vmatprep.subr.mxu1 %v555_v0  ;;  %455 = vmatprep.subr.mxu0 %v555_v0 }
  0x37   :  { %437 = vmatpush3.msra.mxu1 %v145_v22  ;;  %456 = vmatpush3.msra.mxu0 %v247_v30 }
  0x38   :  { %438 = vmatprep.subr.mxu1 %v555_v0  ;;  %457 = vmatprep.subr.mxu0 %v555_v0 }
  0x39   :  { %439 = vmatpush3.msra.mxu1 %v144_v23  ;;  %458 = vmatpush3.msra.mxu0 %v246_v31 }
  0x3a   :  { %440 = vmatprep.subr.mxu1 %v555_v0  ;;  %459 = vmatprep.subr.mxu0 %v555_v0 }
  0x3b   :  { %441 = vmatpush3.msra.mxu1 %v143_v24  ;;  %460 = vmatpush3.msra.mxu0 %v245_v32 }
  0x3c   :  { %442 = vmatprep.subr.mxu1 %v555_v0  ;;  %461 = vmatprep.subr.mxu0 %v555_v0 }
  0x3d   :  { %443 = vmatpush3.msra.mxu1 %v142_v25  ;;  %462 = vmatpush3.msra.mxu0 %v244_v33 }
  0x3e   :  { %463 = vmatprep.subr.mxu0 %v555_v0 }
  0x3f   :  { %464 = vmatpush3.msra.mxu0 %v243_v34 }
  0x40   :  { %465 = vmatprep.subr.mxu0 %v555_v0 }
  0x41   :  { %466 = vmatpush3.msra.mxu0 %v242_v35 }
  0x42   :  { %467 = vmatprep.subr.mxu0 %v555_v0 }
  0x43   :  { %468 = vmatpush3.msra.mxu0 %v241_v36 }
  0x44   :  { %469 = vmatprep.subr.mxu0 %v555_v0 }
  0x45   :  { %470 = vmatpush3.msra.mxu0 %v240_v37 }
  0x46   :  { %471 = vmatprep.subr.mxu0 %v555_v0 }
  0x47   :  { %472 = vmatpush3.msra.mxu0 %v239_v38 }
  0x48   :  { %473 = vmatprep.subr.mxu0 %v555_v0 }
  0x49   :  { %474 = vmatpush3.msra.mxu0 %v238_v44 }
  0x4a   :  { %475 = vmatprep.subr.mxu0 %v555_v0 }
  0x4b   :  { %476 = vmatpush3.msra.mxu0 %v237_v45 }
  0x4c   :  { %477 = vmatprep.subr.mxu0 %v555_v0 }
  0x4d   :  { %478 = vmatpush3.msra.mxu0 %v236_v46 }
  0xed   :  { %v137_v40 = vpop.f32.mrf.mxu0 }
  0xee   :  { %v138_v41 = vadd.f32 %v346_v39, %v137_v40 }
  0xef   :  { %v411_v42 = vpop.f32.mrf.mxu0 }
  0xf0   :  { %v141_v43 = vmax.f32 %v138_v41, 0.0 }
  0xf2   :  { %445 = vmatmul.mubr.f32.vlgmr.msra.gmra.mxu1 %v141_v43 }
 0x1b2   :  { %v231_v48 = vpop.f32.mrf.mxu1 }
 0x1b3   :  { %v232_v49 = vadd.f32 %v348_v47, %v231_v48 }
 0x1b4   :  { %v446_v50 = vpop.f32.mrf.mxu1 }
 0x1b5   :  { %v235_v51 = vmax.f32 %v232_v49, 0.0 }
 0x1b7   :  { %480 = vmatmul.mubr.f32.vlgmr.msra.gmra.mxu0 %v235_v51 }
 0x277   :  { %v325_v53 = vpop.f32.mrf.mxu0 }
 0x278   :  { %v326_v54 = vadd.f32 %v349_v52, %v325_v53 }
 0x279   :  { %v481_v55 = vpop.f32.mrf.mxu0 }
 0x27a   :  { %329 = vst.msk [vmem:[#allocation7] sm:$0xff] %vm67_vm1, %v326_v54 }
 0x27b   :  { %538 = shalt.err (!%p535_p0)
}
 0x27c   :  { %339 = dma.vmem_to_hbm [thread:$0]  %s337_s3, 128, %s788_s7, [#allocation4]  }
 0x27d   :  { %551 = dma.done.wait [#allocation4], 128  }
 0x27e   :  { %552 = vsyncadd [#allocation4], 4294967168 }
 0x27f   :  { %343 = vsyncpa [#allocation3], 1 }
 0x280   :  { %344 = vsyncpa [#allocation6], 1 }
 0x281   :  { %345 = vsyncpa [#allocation4], 1 }

</bundles_post_ra>
